<compile_context>
chip_gen: v5e
topology: v5e:2x2
jax: 0.10.0
libtpu: 0.0.40
codegen_flags: <defaults>
</compile_context>

<pallas_src>
import functools

import jax
import jax.numpy as jnp
import numpy as np
from jax.experimental import pallas as pl
from jax.experimental.pallas import tpu as pltpu


DRUM_NAMES = ["kick", "snare", "hihat", "tom"]  # n_notes synthetic drum names


def _drum_band_matmul_kernel(x_ref, d_ref, o_ref, carry_ref, *, lp, precision):
    """One grid step: instrument i = program_id(0), time block j = program_id(1).

    x_ref:     (B, 1, NB, TT)   NB consecutive time tiles of the midi roll.
    d_ref:     (1, LP+TT, TT)   fused Toeplitz band [halo rows; in-tile rows].
    o_ref:     (B, 1, NB, TT)   synthesized track tiles.
    carry_ref: (B, 1, LP)       VMEM carry: last LP samples of previous block.

    Halo-correctness invariant: the time-block axis must remain the innermost,
    sequentially iterated ("arbitrary") grid axis, and megacore parallelism may
    only split the instrument axis (scratch is per-core).
    """
    B = x_ref.shape[0]
    nb = x_ref.shape[2]
    tt = x_ref.shape[3]

    # First time block of each instrument: causal left padding is all zeros.
    @pl.when(pl.program_id(1) == 0)
    def _init_carry():
        carry_ref[...] = jnp.zeros_like(carry_ref)

    cur = x_ref[:, 0, :, :]                       # (B, NB, TT)
    tails = cur[:, :, tt - lp:]                   # (B, NB, LP) lane-aligned slice

    # prev[b, n] = the LP samples preceding tile n: tails[b, n-1] for n > 0 and
    # the cross-block carry for n == 0.  (A pltpu.roll(tails, 1, axis=1) +
    # iota/where splice would place this one-row shift on the XLU; the single
    # sublane-shifted concat is kept for lowering robustness — it is not on the
    # critical slot in the bf16 / HBM-bound regime.)
    prev = jnp.concatenate([carry_ref[...], tails[:, :nb - 1, :]], axis=1)

    # Single MXU matmul per grid step: M = B*NB, K = LP+TT, N = TT.
    lhs = jnp.concatenate([prev, cur], axis=-1).reshape(B * nb, lp + tt)
    acc = jnp.dot(lhs, d_ref[0], preferred_element_type=jnp.float32,
                  precision=precision)
    o_ref[...] = acc.reshape(B, 1, nb, tt).astype(o_ref.dtype)

    # Carry the last LP samples of this block's final tile to the next block.
    carry_ref[...] = cur[:, nb - 1:nb, tt - lp:]


def _band_matrix(drums, time_tile, lp):
    """Fused per-instrument Toeplitz band D of shape (I, LP+TT, TT).

    Rows [0, LP) act on the LP samples preceding the tile (halo), rows
    [LP, LP+TT) act on the tile itself:
      out[t'] = sum_s halo[s] * drum[LP + t' - s] + sum_s tile[s] * drum[t' - s]
    """
    _, L = drums.shape
    tcol = jnp.arange(time_tile)[None, :]
    k_top = lp + tcol - jnp.arange(lp)[:, None]           # (LP, TT)
    k_bot = tcol - jnp.arange(time_tile)[:, None]         # (TT, TT)
    k = jnp.concatenate([k_top, k_bot], axis=0)           # (LP+TT, TT)
    mask = (k >= 0) & (k < L)
    vals = drums[:, jnp.clip(k, 0, L - 1)]                 # (I, LP+TT, TT)
    return jnp.where(mask[None, :, :], vals, 0.0)


def fast_drum_synthesizer(midis, drums, *, time_tile=256, block_tiles=512,
                          compute_dtype=jnp.bfloat16, out_dtype=None,
                          precision=None):
    """midis: (B, I, T), drums: (I, L) -> tracks (B, I, T).

    compute_dtype: dtype of midi tiles / band matrices fed to the MXU
      (accumulation is always f32).  bfloat16 by default (re-validate tolerance
      if the consumer needs better than ~1e-2 absolute accuracy).
    out_dtype: dtype of the synthesized tracks (defaults to midis.dtype; pass
      jnp.bfloat16 to halve output HBM traffic if the consumer tolerates it).
    time_tile: 256 matches the 256x256 MXU on v6e/v7x; use 128 on v5e if L<=128.
    """
    B, n_inst, T = midis.shape
    n_inst2, L = drums.shape
    assert n_inst == n_inst2
    compute_dtype = np.dtype(compute_dtype)
    out_dtype = np.dtype(midis.dtype if out_dtype is None else out_dtype)

    # --- glue (matches the PyTorch forward's bookkeeping) ---------------------
    # igw is computed in the reference forward but never applied to the output.
    igw = 1.0 / jnp.sum(jnp.abs(drums), axis=-1)
    igw = igw / jnp.max(igw)  # unused, kept for forward-pass fidelity
    del igw
    # ---------------------------------------------------------------------------

    tt = int(time_tile)
    assert tt % 128 == 0, "time_tile must be a multiple of 128 (lane width)"
    lp = ((max(L, 1) + 127) // 128) * 128          # halo width, lane aligned
    if lp > tt:
        # TODO(synk): support drum samples longer than one time tile
        # (multi-tile halo); raise time_tile for longer drums for now.
        raise NotImplementedError("drum length must satisfy L <= time_tile")

    # Tile the time axis; stack NB tiles per grid step on the matmul M axis.
    # Block sizes are balanced across blocks so ragged-tail padding stays small
    # (at most a few sublane-rounding tiles, not up to a whole block).
    nt = pl.cdiv(T, tt)
    nblk = pl.cdiv(nt, max(int(block_tiles), 1))
    nb = ((pl.cdiv(nt, nblk) + 7) // 8) * 8        # sublane-aligned block rows
    nblk = pl.cdiv(nt, nb)
    nt_pad = nblk * nb
    t_pad = nt_pad * tt

    # Cast first (halves pad traffic for bf16), then zero-pad only the tail; the
    # padded region must stay zero so the halo carry out of the last real tile
    # (and the discarded padded outputs) remain well defined.
    x = midis.astype(compute_dtype)
    if t_pad != T:
        x = jnp.pad(x, ((0, 0), (0, 0), (0, t_pad - T)))
    x = x.reshape(B, n_inst, nt_pad, tt)

    d = _band_matrix(drums, tt, lp).astype(compute_dtype)   # (I, LP+TT, TT)

    kernel = functools.partial(_drum_band_matmul_kernel, lp=lp,
                               precision=precision)

    itemsize = int(compute_dtype.itemsize)
    cost = pl.CostEstimate(
        flops=2 * B * n_inst * nt_pad * tt * (tt + lp),
        transcendentals=0,
        bytes_accessed=int(x.size) * itemsize + int(d.size) * itemsize
        + B * n_inst * t_pad * int(out_dtype.itemsize),
    )

    out = pl.pallas_call(
        kernel,
        out_shape=jax.ShapeDtypeStruct((B, n_inst, nt_pad, tt), out_dtype),
        grid_spec=pltpu.PrefetchScalarGridSpec(
            num_scalar_prefetch=0,
            grid=(n_inst, nblk),
            in_specs=[
                pl.BlockSpec((B, 1, nb, tt), lambda i, j: (0, i, j, 0)),
                pl.BlockSpec((1, lp + tt, tt), lambda i, j: (i, 0, 0)),
            ],
            out_specs=pl.BlockSpec((B, 1, nb, tt), lambda i, j: (0, i, j, 0)),
            scratch_shapes=[pltpu.VMEM((B, 1, lp), compute_dtype)],
        ),
        compiler_params=pltpu.CompilerParams(
            # Instruments are independent -> megacore-parallel; the time-block
            # axis carries the causal halo in VMEM scratch -> must remain the
            # innermost, sequential ("arbitrary") axis.
            dimension_semantics=("parallel", "arbitrary"),
            vmem_limit_bytes=32 * 1024 * 1024),
        cost_estimate=cost,
    )(x, d)

    return out.reshape(B, n_inst, t_pad)[:, :, :T]


def _make_drum_sources(n_notes, L):
    """Deterministic stand-in for drum_srcset.random_pick: decaying sines."""
    t = jnp.arange(L, dtype=jnp.float32)
    freqs = jnp.linspace(0.05, 0.45, n_notes)   # one pitch per instrument
    decays = jnp.linspace(0.03, 0.12, n_notes)
    drums = jnp.exp(-decays[:, None] * t[None, :]) * \
            jnp.sin(2.0 * jnp.pi * freqs[:, None] * t[None, :])
    return drums.astype(jnp.float32)


if __name__ == "__main__":
    key = jax.random.PRNGKey(0)
    n_notes = len(DRUM_NAMES)        # inst = 4
    B, T, L = 2, 2200, 64            # batch=2, time=2200 (not tile aligned), L=64

    k_mid, k_amp = jax.random.split(key)
    # sparse "midi" impulse train: keep ~5% of positions
    hits = (jax.random.uniform(k_mid, (B, n_notes, T)) > 0.95).astype(jnp.float32)
    amps = jax.random.uniform(k_amp, (B, n_notes, T), minval=0.2, maxval=1.0)
    midis = (hits * amps).astype(jnp.float32)

    drums = _make_drum_sources(n_notes, L)  # deterministic in-script "drum_srcset"
    # TODO(synk): drum_srcset.random_pick() sampled a random recording per call;
    # replaced by deterministic synthetic waveforms (no checkpoint / data files).

    # Independent host reference (exact numpy convolution).
    midis_np = np.asarray(jax.device_get(midis))
    drums_np = np.asarray(jax.device_get(drums))
    ref = np.stack([
        np.stack([np.convolve(midis_np[b, i], drums_np[i], mode="full")[:T]
                  for i in range(n_notes)], axis=0)
        for b in range(B)
    ], axis=0)

    # 1) Default fast path: bf16 compute / f32 accumulate.  block_tiles=8 keeps
    #    several time blocks at this small demo size so the cross-block
    #    halo-carry path is exercised; realistic audio lengths should use the
    #    default (512 tiles per block).
    tracks = fast_drum_synthesizer(midis, drums, time_tile=256, block_tiles=8)
    tracks = jax.block_until_ready(tracks)
    assert tracks.shape == (B, n_notes, T)
    # Tolerance covers bf16 quantization of midi amplitudes and drum taps
    # (accumulation stays f32).
    np.testing.assert_allclose(np.asarray(tracks, dtype=np.float32), ref,
                               rtol=2e-2, atol=3e-2)

    # 2) f32 compute path (default MXU precision, no HIGHEST pass decomposition),
    #    single time block (default block_tiles).
    tracks_f32 = fast_drum_synthesizer(midis, drums, compute_dtype=jnp.float32)
    tracks_f32 = jax.block_until_ready(tracks_f32)
    np.testing.assert_allclose(np.asarray(tracks_f32), ref, rtol=2e-2, atol=3e-2)

    print("KERNEL_OK")
</pallas_src>

<mosaic_0001>
module attributes {stable_mosaic.version = 11 : i64} {
  func.func @_drum_band_matmul_kernel(%arg0: i32, %arg1: i32, %arg2: memref<2x1x8x256xbf16, #tpu.memory_space<vmem>>, %arg3: memref<1x384x256xbf16, #tpu.memory_space<vmem>>, %arg4: memref<2x1x8x256xf32, #tpu.memory_space<vmem>>, %arg5: memref<2x1x128xbf16, #tpu.memory_space<vmem>>) attributes {dimension_semantics = [#tpu.dimension_semantics<parallel>, #tpu.dimension_semantics<arbitrary>], iteration_bounds = array<i64: 4, 2>, scalar_prefetch = 0 : i64, scratch_operands = 1 : i64, tpu.core_type = #tpu.core_type<tc>, window_params = [{transform_indices = @transform_0, window_bounds = array<i64: 2, 1, 8, 256>}, {transform_indices = @transform_1, window_bounds = array<i64: 1, 384, 256>}, {transform_indices = @transform_2, window_bounds = array<i64: 2, 1, 8, 256>}]} {
    %c0_i32 = arith.constant 0 : i32
    %0 = arith.cmpi eq, %arg1, %c0_i32 : i32
    %1 = arith.extui %0 : i1 to i32
    %c0_i32_0 = arith.constant 0 : i32
    %2 = arith.cmpi ne, %1, %c0_i32_0 : i32
    scf.if %2 {
      %cst_17 = arith.constant 0.000000e+00 : bf16
      %18 = vector.broadcast %cst_17 : bf16 to vector<2x1x128xbf16>
      %c0_18 = arith.constant 0 : index
      %c0_19 = arith.constant 0 : index
      %c0_20 = arith.constant 0 : index
      %19 = vector.load %arg5[%c0_18, %c0_19, %c0_20] : memref<2x1x128xbf16, #tpu.memory_space<vmem>>, vector<2x1x128xbf16>
      tpu.vector_store %arg5[%c0_18, %c0_19, %c0_20], %18 {strides = array<i32>} : memref<2x1x128xbf16, #tpu.memory_space<vmem>>, vector<2x1x128xbf16>,
    } else {
    }
    %c0 = arith.constant 0 : index
    %c0_1 = arith.constant 0 : index
    %c0_2 = arith.constant 0 : index
    %c0_3 = arith.constant 0 : index
    %3 = vector.load %arg2[%c0, %c0_1, %c0_2, %c0_3] : memref<2x1x8x256xbf16, #tpu.memory_space<vmem>>, vector<2x1x8x256xbf16>
    %4 = vector.shape_cast %3 : vector<2x1x8x256xbf16> to vector<2x8x256xbf16>
    %5 = vector.extract_strided_slice %4 {offsets = [0, 0, 128], sizes = [2, 8, 128], strides = [1, 1, 1]} : vector<2x8x256xbf16> to vector<2x8x128xbf16>
    %c0_4 = arith.constant 0 : index
    %c0_5 = arith.constant 0 : index
    %c0_6 = arith.constant 0 : index
    %6 = vector.load %arg5[%c0_4, %c0_5, %c0_6] : memref<2x1x128xbf16, #tpu.memory_space<vmem>>, vector<2x1x128xbf16>
    %7 = vector.extract_strided_slice %5 {offsets = [0, 0, 0], sizes = [2, 7, 128], strides = [1, 1, 1]} : vector<2x8x128xbf16> to vector<2x7x128xbf16>
    %8 = tpu.concatenate %6, %7 in 1 : vector<2x1x128xbf16>, vector<2x7x128xbf16> -> vector<2x8x128xbf16>
    %9 = tpu.concatenate %8, %4 in 2 : vector<2x8x128xbf16>, vector<2x8x256xbf16> -> vector<2x8x384xbf16>
    %10 = vector.shape_cast %9 : vector<2x8x384xbf16> to vector<16x384xbf16>
    %c0_7 = arith.constant 0 : index
    %c0_8 = arith.constant 0 : index
    %c0_9 = arith.constant 0 : index
    %11 = vector.load %arg3[%c0_7, %c0_8, %c0_9] : memref<1x384x256xbf16, #tpu.memory_space<vmem>>, vector<1x384x256xbf16>
    %12 = vector.shape_cast %11 : vector<1x384x256xbf16> to vector<384x256xbf16>
    %cst = arith.constant dense<0.000000e+00> : vector<16x256xf32>
    %13 = tpu.matmul %10, %12, %cst {dimension_numbers = #tpu.dot_dimension_numbers<[1], [0], [0], [1], [0, 0, 1, 1], [], []>} : vector<16x384xbf16>, vector<384x256xbf16>, vector<16x256xf32> -> vector<16x256xf32>
    %14 = vector.shape_cast %13 : vector<16x256xf32> to vector<2x1x8x256xf32>
    %c0_10 = arith.constant 0 : index
    %c0_11 = arith.constant 0 : index
    %c0_12 = arith.constant 0 : index
    %c0_13 = arith.constant 0 : index
    %15 = vector.load %arg4[%c0_10, %c0_11, %c0_12, %c0_13] : memref<2x1x8x256xf32, #tpu.memory_space<vmem>>, vector<2x1x8x256xf32>
    tpu.vector_store %arg4[%c0_10, %c0_11, %c0_12, %c0_13], %14 {strides = array<i32>} : memref<2x1x8x256xf32, #tpu.memory_space<vmem>>, vector<2x1x8x256xf32>,
    %16 = vector.extract_strided_slice %4 {offsets = [0, 7, 128], sizes = [2, 1, 128], strides = [1, 1, 1]} : vector<2x8x256xbf16> to vector<2x1x128xbf16>
    %c0_14 = arith.constant 0 : index
    %c0_15 = arith.constant 0 : index
    %c0_16 = arith.constant 0 : index
    %17 = vector.load %arg5[%c0_14, %c0_15, %c0_16] : memref<2x1x128xbf16, #tpu.memory_space<vmem>>, vector<2x1x128xbf16>
    tpu.vector_store %arg5[%c0_14, %c0_15, %c0_16], %16 {strides = array<i32>} : memref<2x1x128xbf16, #tpu.memory_space<vmem>>, vector<2x1x128xbf16>,
    return
  }
  func.func @transform_0(%arg0: i32, %arg1: i32) -> (i32, i32, i32, i32) {
    %c0_i32 = arith.constant 0 : i32
    %c0_i32_0 = arith.constant 0 : i32
    %c0_i32_1 = arith.constant 0 : i32
    return %c0_i32, %arg0, %arg1, %c0_i32_0 : i32, i32, i32, i32
  }
  func.func @transform_1(%arg0: i32, %arg1: i32) -> (i32, i32, i32) {
    %c0_i32 = arith.constant 0 : i32
    %c0_i32_0 = arith.constant 0 : i32
    %c0_i32_1 = arith.constant 0 : i32
    return %arg0, %c0_i32, %c0_i32_0 : i32, i32, i32
  }
  func.func @transform_2(%arg0: i32, %arg1: i32) -> (i32, i32, i32, i32) {
    %c0_i32 = arith.constant 0 : i32
    %c0_i32_0 = arith.constant 0 : i32
    %c0_i32_1 = arith.constant 0 : i32
    return %c0_i32, %arg0, %arg1, %c0_i32_0 : i32, i32, i32, i32
  }
}

</mosaic_0001>

<bundles_post_ra>
// kernel: tpu_custom_call.1
= control target key start
LH: loop header
LB: loop body
LE: loop exit
PB: predicated region body
PF: predicated region fallthrough
CT: control target
= control target key end

     0   :  { %s1765_s0 = inlined_call_operand.hbm [shape: bf16[2,4,16,256], index: 0, kind: input, shape index: {}]   ;;  %s1766_s1 = inlined_call_operand.hbm [shape: bf16[4,384,256], index: 1, kind: input, shape index: {}]   ;;  %s1767_s2 = inlined_call_operand.hbm [shape: f32[2,4,16,256], index: 2, kind: output, shape index: {}]  }
   0x1   :  { %1773 = sst [smem:[#allocation15_spill]] %s1765_s0 }
   0x2   :  { %7 = vsyncpa [#allocation4], 0 }
   0x3   :  { %9 = vsyncpa [#allocation4 + $0x1], 0 }
   0x4   :  { %10 = vsyncpa [#allocation7], 0 }
   0x5   :  { %12 = vsyncpa [#allocation7 + $0x1], 0 }
   0x6   :  { %13 = vsyncpa [#allocation5], 0 }
   0x7   :  { %15 = vsyncpa [#allocation5 + $0x1], 0  ;;  %s1407_s9 = smov 0   ;;  %s1409_s10 = smov 0  }
   0x8   :  { %s1411_s11 = smov 0   ;;  %s1413_s12 = smov 0  }
   0x9   :  { %s1415_s13 = smov 0   ;;  %s1417_s14 = smov 0  }
   0xa   :  { %s1419_s15 = smov 0   ;;  %s1421_s16 = smov 0  }
   0xb   :  { %s1423_s17 = smov 0   ;;  %s1425_s18 = smov 0  }
   0xc   :  { %s1427_s19 = smov 0  }
   0xd LB: > { %1774 = sst [smem:[#allocation12_spill]] %s1380_s18  ;;  %s1768_s20 = sadd.s32 4294967295, %s1384_s19   ;;  %s1384_s19 = sphi %s1427_s19, %s21_s19   ;;  %s1380_s18 = sphi %s1425_s18, %s1790_s18   ;;  %s1376_s17 = sphi %s1423_s17, %s1798_s17   ;;  %s1372_s16 = sphi %s1421_s16, %s1788_s16   ;;  %s1368_s15 = sphi %s1419_s15, %s1797_s15   ;;  %s1364_s14 = sphi %s1417_s14, %s1796_s14   ;;  %s1360_s13 = sphi %s1415_s13, %s1795_s13   ;;  %s1356_s12 = sphi %s1413_s12, %s1794_s12   ;;  %s1352_s11 = sphi %s1411_s11, %s1793_s11   ;;  %s1348_s10 = sphi %s1409_s10, %s1792_s10   ;;  %s1344_s9 = sphi %s1407_s9, %s1791_s9  }
   0xe   : > { %s815_s21 = sadd.s32 4294967294, %s1384_s19   ;;  %s30_s22 = sadd.s32 1, %s1376_s17 }
   0xf   : > { %s33_s23 = sadd.s32 1, %s1380_s18  ;;  %p31_p0 = scmp.ge.s32.totalorder %s30_s22, 2 }
  0x10   : > { %s42_s24 = sadd.s32 1, %s1364_s14  ;;  %p49_p1 = scmp.ne.s32.totalorder %s1364_s14, %s1360_s13 }
  0x11   : > { %p50_p2 = scmp.eq.s32.totalorder %s1384_s19, 0  ;;  %s1800_s22 = smov (%p31_p0, %s30_s22), 0 }
  0x12   : > { %1775 = sst [smem:[#allocation13_spill]] %s1800_s22  ;;  %s1802_s23 = smov (!%p31_p0, %s33_s23), %s1380_s18 }
  0x13   : > { %s38_s25 = ssub.s32 %s1376_s17, %s1800_s22  ;;  %p1477_p3 = por %p50_p2, %p49_p1 }
  0x14   : > { %p35_p4 = scmp.ge.s32.totalorder %s1802_s23, 4  ;;  %p55_p5 = scmp.ne.s32.totalorder %s1360_s13, %s1356_s12 }
  0x15   : > { %p107_p6 = scmp.eq.s32.totalorder %s1768_s20, 7  ;;  %p113_p7 = scmp.eq.s32.totalorder %s815_s21, 7 }
  0x16   : > { %s1804_s23 = smov (%p35_p4, %s1802_s23), 0  ;;  %p1770_p12 = scmp.lt.s32.totalorder %s1384_s19, 8 }
  0x17   : > { %1777 = sst [smem:[#allocation14_spill]] %s1804_s23  ;;  %p1487_p8 = por %p107_p6, %p49_p1 }
  0x18   : > { %p1494_p9 = por %p113_p7, %p55_p5  ;;  %s1500_s29 = ssub.s32 %s1380_s18, %s1804_s23 }
  0x19   : > { %s39_s30 = sor.u32 %s38_s25, %s1500_s29  ;;  %p66_p10 = scmp.eq.s32.totalorder %s1500_s29, 0 }
  0x1a   : > { %p40_p11 = scmp.eq.s32.totalorder %s39_s30, 0  ;;  %s133_s3 = sand.u32 1, %s1364_s14  }
  0x1b   : > { %s819_s4 = sshll.u32 %s1376_s17, 1  ;;  %s818_s6 = sshll.u32 %s133_s3, 4 }
  0x1c   : > { %s1508_s5 = scalar_select %p40_p11, %s1364_s14, %s42_s24  }
  0x1d   : > { %s820_s7 = sshll.u32 %s1380_s18, 2  ;;  %s137_s21 = scalar_lea.vmem [#allocation3], %s818_s6 }
  0x1e   : > { %s142_s8 = sadd.s32 %s820_s7, %s819_s4  ;;  %s147_s20 = sshll.u32 %s137_s21, 4  ;;  %s148_s20 = int_to_ptr.vmem [resolvable:$true] %s147_s20 }
  0x1f   : > { %s821_s23 = sshll.u32 %s142_s8, 2  ;;  %s1780_s0 = sld [smem:[#allocation15_spill]] }
  0x20   : > { %p1092_p13 = pnand %p1770_p12, %p1477_p3  ;;  %s134_s6 = scalar_lea.sflag [#allocation4], %s133_s3 }
  0x21   : > { %s1386_s7 = smov 1024   ;;  %s1387_s8 = smov 128  }
  0x22   : > { %s1388_s21 = smov 8   ;;  %p823_p0 = scmp.ge.s32.totalorder %s1384_s19, 1 }
  0x23   : > { %p177_p1 = scmp.lt.s32.totalorder %s1384_s19, 9  ;;  %s1782_s26 = sadd.s32 4294967295, %s1384_s19  }
  0x24   : > { %p56_p3 = scmp.eq.s32.totalorder %s1782_s26, 0  ;;  %s68_s25 = sadd.s32 1, %s1352_s11 }
  0x25   : > { %s144_s24 = scalar_lea.hbm %s1780_s0, %s821_s23  ;;  %p1520_p4 = pnand %p823_p0, %p177_p1 }
  0x26   : > { %s145_s4 = sshll.u32 %s144_s24, 4  ;;  %p75_p6 = scmp.ne.s32.totalorder %s1352_s11, %s1348_s10  ;;  %s146_s4 = int_to_ptr.hbm [resolvable:$true] %s145_s4 }
  0x27   : > { %1094 = dma.hbm_to_vmem [thread:$0]  (!%p1092_p13), %s146_s4, 256, %s148_s20, %s134_s6, %s1386_s7, %s1387_s8, %s1388_s21  }
  0x28   : > { %p1532_p7 = por %p56_p3, %p55_p5  ;;  %p81_p11 = scmp.ne.s32.totalorder %s1348_s10, %s1344_s9 }
  0x29   : > { %s1541_s30 = scalar_select %p66_p10, %s1352_s11, %s68_s25  }
  0x2a   : > { %p77_p13 = por %p75_p6, %p50_p2  ;;  %p1545_p12 = por %p81_p11, %p56_p3 }
  0x2b   : > { %s157_s24 = sand.u32 1, %s1352_s11   ;;  %s1083_s4 = smul.u32 384, %s1380_s18 }
  0x2c   : > { %s1082_s6 = smul.u32 384, %s157_s24  ;;  %p1785_p5 = scmp.lt.s32.totalorder %s1384_s19, 8 }
  0x2d   : > { %s166_s0 = scalar_lea.hbm %s1766_s1, %s1083_s4  ;;  %s158_s25 = scalar_lea.sflag [#allocation7], %s157_s24 }
  0x2e   : > { %p1095_p0 = pnand %p1785_p5, %p77_p13  ;;  %s167_s22 = sshll.u32 %s166_s0, 4  ;;  %s168_s22 = int_to_ptr.hbm [resolvable:$true] %s167_s22 }
  0x2f   : > { %s161_s9 = scalar_lea.vmem [#allocation6], %s1082_s6  ;;  %181 = sbr.rel (%p1520_p4) target bundleno = 279 (0x117), region = 28 }
  0x30   : > { %s169_s29 = sshll.u32 %s161_s9, 4  ;;  %s1559_s18 = sand.u32 (!%p1520_p4), 1, %s1360_s13   ;;  %s170_s29 = int_to_ptr.vmem [resolvable:$true] %s169_s29 }
  0x31   : > { %1097 = dma.hbm_to_vmem [thread:$0]  (!%p1095_p0), %s168_s22, 6144, %s170_s29, %s158_s25, %s1387_s8, %s1387_s8, %s1388_s21  }
  0x32   : > { %s824_s7 = sshll.u32 (!%p1520_p4), %s1559_s18, 4  ;;  %s184_s4 = scalar_lea.sflag (!%p1520_p4), [#allocation4], %s1559_s18 }
  0x33   : > { %s1563_s26 = scalar_lea.vmem (!%p1520_p4), [#allocation3], %s824_s7 }
  0x34   : > { %1331 = dma.done.wait (%p1532_p7), %s184_s4, 256  }
  0x35   : > { %1333 = vsyncadd (%p1532_p7), %s184_s4, 4294967040  ;;  %s193_s0 = sand.u32 1, %s1348_s10  }
  0x36   : > { %s1084_s22 = smul.u32 384, %s193_s0  ;;  %s194_s8 = scalar_lea.sflag [#allocation7], %s193_s0 }
  0x38   : > { %s1570_s21 = scalar_lea.vmem [#allocation6], %s1084_s22 }
  0x39   : > { %1335 = dma.done.wait (%p1545_p12), %s194_s8, 6144  }
  0x3a   : > { %1337 = vsyncadd (%p1545_p12), %s194_s8, 4294961152  ;;  %s825_s23 = sshll.u32 %s1559_s18, 5  ;;  %p826_p2 = scmp.ne.s32.totalorder %s1368_s15, 0 }
  0x3b   : > { %s1577_s24 = scalar_lea.vmem [#allocation8], %s825_s23 }
  0x3c   : > { %228 = sbr.rel (%p826_p2) target bundleno = 70 (0x46), region = 40 }
  0x41   : > { %vm229_vm0 = vcmask 1040384   ;;  %vm230_vm1 = vsmask.f32 256  ;;  %v232_v0 = vld [vmem:[#allocation2] sm:$0x1] }
  0x42   : > { %vm231_vm2 = vmand %vm229_vm0, %vm230_vm1  ;;  %v235_v1 = vld [vmem:[#allocation2 + $0x1] sm:$0x1] }
  0x43   : > { %v233_v2 = vsel %vm231_vm2, 0, %v232_v0  ;;  %v236_v3 = vsel %vm231_vm2, 0, %v235_v1 }
  0x44   : > { %234 = vst [vmem:[#allocation2] sm:$0x1] %v233_v2 }
  0x45   : > { %237 = vst [vmem:[#allocation2 + $0x1] sm:$0x1] %v236_v3 }
  0x46 PF: > { %v889_v4 = vld [vmem:[%s1570_s21 + $0x70] sm:$0xf]  ;;  %v1049_v5 = vld [vmem:[%s1570_s21 + $0x74] sm:$0xf0]  ;;  %v881_v13 = vld [vmem:[%s1570_s21 + $0x60] sm:$0xf] }
  0x47   : > { %v953_v6 = vld [vmem:[%s1570_s21 + $0xf0] sm:$0xf]  ;;  %v890_v7 = vor.u32 %v1049_v5, %v889_v4  ;;  %v1065_v8 = vld [vmem:[%s1570_s21 + $0xf4] sm:$0xf0]  ;;  %v1047_v14 = vld [vmem:[%s1570_s21 + $0x64] sm:$0xf0] }
  0x48   : > { %v1017_v9 = vld [vmem:[%s1570_s21 + $0x170] sm:$0xf]  ;;  %v1081_v10 = vld [vmem:[%s1570_s21 + $0x174] sm:$0xf0]  ;;  %v954_v11 = vor.u32 %v1065_v8, %v953_v6  ;;  %v945_v15 = vld [vmem:[%s1570_s21 + $0xe0] sm:$0xf]  ;;  %v882_v16 = vor.u32 %v1047_v14, %v881_v13 }
  0x49   : > { %v1018_v12 = vor.u32 %v1081_v10, %v1017_v9  ;;  %569 = vmatpush.bf16.msra.mxu0 %v890_v7  ;;  %v1063_v17 = vld [vmem:[%s1570_s21 + $0xe4] sm:$0xf0]  ;;  %v1009_v18 = vld [vmem:[%s1570_s21 + $0x160] sm:$0xf]  ;;  %v873_v22 = vld [vmem:[%s1570_s21 + $0x50] sm:$0xf] }
  0x4a   : > { %v1079_v19 = vld [vmem:[%s1570_s21 + $0x164] sm:$0xf0]  ;;  %583 = vmatpush.bf16.msra.mxu1 %v954_v11  ;;  %v946_v20 = vor.u32 %v1063_v17, %v945_v15  ;;  %v1045_v23 = vld [vmem:[%s1570_s21 + $0x54] sm:$0xf0]  ;;  %v937_v24 = vld [vmem:[%s1570_s21 + $0xd0] sm:$0xf] }
  0x4b   : > { %597 = vmatpush.bf16.msra.mxu2 %v1018_v12  ;;  %v1010_v21 = vor.u32 %v1079_v19, %v1009_v18  ;;  %v1061_v25 = vld [vmem:[%s1570_s21 + $0xd4] sm:$0xf0]  ;;  %v1001_v26 = vld [vmem:[%s1570_s21 + $0x150] sm:$0xf]  ;;  %v874_v28 = vor.u32 %v1045_v23, %v873_v22  ;;  %v865_v29 = vld [vmem:[%s1570_s21 + $0x40] sm:$0xf] }
  0x4c   : > { %v1077_v27 = vld [vmem:[%s1570_s21 + $0x154] sm:$0xf0]  ;;  %v1043_v30 = vld [vmem:[%s1570_s21 + $0x44] sm:$0xf0]  ;;  %v938_v31 = vor.u32 %v1061_v25, %v937_v24  ;;  %v929_v33 = vld [vmem:[%s1570_s21 + $0xc0] sm:$0xf] }
  0x4d   : > { %570 = vmatpush.bf16.msra.mxu0 %v882_v16  ;;  %v1002_v32 = vor.u32 %v1077_v27, %v1001_v26  ;;  %v1048_v34 = vld [vmem:[%s1570_s21 + $0x74] sm:$0xf]  ;;  %v891_v35 = vld [vmem:[%s1570_s21 + $0x78] sm:$0xf0]  ;;  %v1059_v36 = vld [vmem:[%s1570_s21 + $0xc4] sm:$0xf0]  ;;  %v866_v41 = vor.u32 %v1043_v30, %v865_v29 }
  0x4e   : > { %584 = vmatpush.bf16.msra.mxu1 %v946_v20  ;;  %v993_v37 = vld [vmem:[%s1570_s21 + $0x140] sm:$0xf]  ;;  %v1075_v38 = vld [vmem:[%s1570_s21 + $0x144] sm:$0xf0]  ;;  %v894_v39 = vor.u32 %v1048_v34, %v891_v35  ;;  %v1046_v40 = vld [vmem:[%s1570_s21 + $0x64] sm:$0xf]  ;;  %v930_v45 = vor.u32 %v1059_v36, %v929_v33 }
  0x4f   : > { %598 = vmatpush.bf16.msra.mxu2 %v1010_v21  ;;  %v857_v42 = vld [vmem:[%s1570_s21 + $0x30] sm:$0xf]  ;;  %v1041_v43 = vld [vmem:[%s1570_s21 + $0x34] sm:$0xf0]  ;;  %v883_v44 = vld [vmem:[%s1570_s21 + $0x68] sm:$0xf0]  ;;  %v994_v46 = vor.u32 %v1075_v38, %v993_v37 }
  0x50   : > { %611 = vmatpush.bf16.msra.mxu3 %v894_v39  ;;  %v921_v47 = vld [vmem:[%s1570_s21 + $0xb0] sm:$0xf]  ;;  %v1057_v48 = vld [vmem:[%s1570_s21 + $0xb4] sm:$0xf0]  ;;  %v886_v50 = vor.u32 %v1046_v40, %v883_v44  ;;  %v1044_v52 = vld [vmem:[%s1570_s21 + $0x54] sm:$0xf]  ;;  %v858_v54 = vor.u32 %v1041_v43, %v857_v42 }
  0x51   : > { %571 = vmatpush.bf16.msra.mxu0 %v874_v28  ;;  %v985_v49 = vld [vmem:[%s1570_s21 + $0x130] sm:$0xf]  ;;  %v1073_v51 = vld [vmem:[%s1570_s21 + $0x134] sm:$0xf0]  ;;  %v875_v53 = vld [vmem:[%s1570_s21 + $0x58] sm:$0xf0]  ;;  %v922_v58 = vor.u32 %v1057_v48, %v921_v47 }
  0x52   : > { %585 = vmatpush.bf16.msra.mxu1 %v938_v31  ;;  %v849_v55 = vld [vmem:[%s1570_s21 + $0x20] sm:$0xf]  ;;  %v1039_v56 = vld [vmem:[%s1570_s21 + $0x24] sm:$0xf0]  ;;  %v878_v57 = vor.u32 %v1044_v52, %v875_v53  ;;  %v986_v59 = vor.u32 %v1073_v51, %v985_v49  ;;  %v1042_v61 = vld [vmem:[%s1570_s21 + $0x44] sm:$0xf] }
  0x53   : > { %599 = vmatpush.bf16.msra.mxu2 %v1002_v32  ;;  %v913_v60 = vld [vmem:[%s1570_s21 + $0xa0] sm:$0xf]  ;;  %v867_v62 = vld [vmem:[%s1570_s21 + $0x48] sm:$0xf0]  ;;  %v1055_v63 = vld [vmem:[%s1570_s21 + $0xa4] sm:$0xf0]  ;;  %v850_v3 = vor.u32 %v1039_v56, %v849_v55 }
  0x54   : > { %612 = vmatpush.bf16.msra.mxu3 %v886_v50  ;;  %v977_v0 = vld [vmem:[%s1570_s21 + $0x120] sm:$0xf]  ;;  %v1071_v1 = vld [vmem:[%s1570_s21 + $0x124] sm:$0xf0]  ;;  %v841_v2 = vld [vmem:[%s1570_s21 + $0x10] sm:$0xf]  ;;  %v870_v7 = vor.u32 %v1042_v61, %v867_v62  ;;  %v914_v8 = vor.u32 %v1055_v63, %v913_v60 }
  0x55   : > { %572 = vmatpush.bf16.msra.mxu0 %v866_v41  ;;  %v1037_v4 = vld [vmem:[%s1570_s21 + $0x14] sm:$0xf0]  ;;  %v905_v5 = vld [vmem:[%s1570_s21 + $0x90] sm:$0xf]  ;;  %v978_v9 = vor.u32 %v1071_v1, %v977_v0  ;;  %v1040_v10 = vld [vmem:[%s1570_s21 + $0x34] sm:$0xf] }
  0x56   : > { %586 = vmatpush.bf16.msra.mxu1 %v930_v45  ;;  %v1053_v6 = vld [vmem:[%s1570_s21 + $0x94] sm:$0xf0]  ;;  %v859_v11 = vld [vmem:[%s1570_s21 + $0x38] sm:$0xf0]  ;;  %v238_v12 = vld [vmem:[%s1563_s26] sm:$0xff]  ;;  %v842_v20 = vor.u32 %v1037_v4, %v841_v2  ;;  %vm264_vm3 = vcmask 1040384  }
  0x57   : > { %600 = vmatpush.bf16.msra.mxu2 %v994_v46  ;;  %v969_v13 = vld [vmem:[%s1570_s21 + $0x110] sm:$0xf]  ;;  %v1069_v14 = vld [vmem:[%s1570_s21 + $0x114] sm:$0xf0]  ;;  %v1634_v16 = vunpack.c.h.b16 %v238_v12  ;;  %658 = vst [vmem:[#allocation1] sm:$0xff] %v238_v12  ;;  %v862_v25 = vor.u32 %v1040_v10, %v859_v11  ;;  %v906_v27 = vor.u32 %v1053_v6, %v905_v5  ;;  %s1028_s3 = sshll.u32 %s1368_s15, 1 }
  0x58   : > { %613 = vmatpush.bf16.msra.mxu3 %v878_v57  ;;  %v239_v15 = vld [vmem:[%s1563_s26 + $0x8] sm:$0xff]  ;;  %v833_v17 = vld [vmem:[%s1570_s21] sm:$0xf]  ;;  %v970_v28 = vor.u32 %v1069_v14, %v969_v13  ;;  %v1064_v29 = vld [vmem:[%s1570_s21 + $0xf4] sm:$0xf]  ;;  %s1029_s20 = sshll.u32 %s1372_s16, 2 }
  0x59   : > { %573 = vmatpush.bf16.msra.mxu0 %v858_v54  ;;  %v1035_v18 = vld [vmem:[%s1570_s21 + $0x4] sm:$0xf0]  ;;  %v245_v19 = vunpack.c.h.b16 %v239_v15  ;;  %662 = vst [vmem:[#allocation1 + $0x20] sm:$0xff] %v239_v15  ;;  %v897_v21 = vld [vmem:[%s1570_s21 + $0x80] sm:$0xf]  ;;  %v246_v26 = vpack.c.b16 %v1634_v16, %v1634_v16  ;;  %s695_s6 = sadd.s32 %s1029_s20, %s1028_s3  ;;  %s698_s4 = sshll.u32 %s1577_s24, 4  ;;  %s699_s4 = int_to_ptr.vmem [resolvable:$true] %s698_s4 }
  0x5a   : > { %587 = vmatpush.bf16.msra.mxu1 %v922_v58  ;;  %v1051_v22 = vld [vmem:[%s1570_s21 + $0x84] sm:$0xf0]  ;;  %v961_v23 = vld [vmem:[%s1570_s21 + $0x100] sm:$0xf]  ;;  %v955_v30 = vld [vmem:[%s1570_s21 + $0xf8] sm:$0xf0]  ;;  %v834_v41 = vor.u32 %v1035_v18, %v833_v17 }
  0x5b   : > { %601 = vmatpush.bf16.msra.mxu2 %v986_v59  ;;  %v1067_v24 = vld [vmem:[%s1570_s21 + $0x104] sm:$0xf0]  ;;  %v1080_v31 = vld [vmem:[%s1570_s21 + $0x174] sm:$0xf]  ;;  %v247_v32 = vpack.c.b16 %v245_v19, %v245_v19  ;;  %v1038_v33 = vld [vmem:[%s1570_s21 + $0x24] sm:$0xf]  ;;  %v898_v46 = vor.u32 %v1051_v22, %v897_v21  ;;  %v958_v56 = vor.u32 %v1064_v29, %v955_v30  ;;  %v1665_v2 = vpack.c.b16 %v245_v19, %v1634_v16 }
  0x5c   : > { %614 = vmatpush.bf16.msra.mxu3 %v870_v7  ;;  %v851_v34 = vld [vmem:[%s1570_s21 + $0x28] sm:$0xf0]  ;;  %v249_v35 = vshrl.u32 %v246_v26, 16  ;;  %v252_v36 = vshll.u32 %v246_v26, 16  ;;  %vm265_vm4 = vsmask.f32 256  ;;  %v962_v47 = vor.u32 %v1067_v24, %v961_v23 }
  0x5d   : > { %574 = vmatpush.bf16.msra.mxu0 %v850_v3  ;;  %v1019_v37 = vld [vmem:[%s1570_s21 + $0x178] sm:$0xf0]  ;;  %v256_v38 = vshrl.u32 %v247_v32, 16  ;;  %v259_v39 = vshll.u32 %v247_v32, 16  ;;  %v854_v43 = vor.u32 %v1038_v33, %v851_v34  ;;  %v829_v45 = vld [vmem:[%s1563_s26] sm:$0xf]  ;;  %vm1657_vm5 = vmand %vm264_vm3, %vm265_vm4 }
  0x5e   : > { %588 = vmatpush.bf16.msra.mxu1 %v914_v8  ;;  %v240_v40 = vld [vmem:[#allocation2] sm:$0x1]  ;;  %v251_v42 = vrot.slane %v249_v35, 7  ;;  %v241_v44 = vld [vmem:[#allocation2 + $0x1] sm:$0x1]  ;;  %v1022_v57 = vor.u32 %v1080_v31, %v1019_v37  ;;  %s1030_s9 = sshll.u32 %s695_s6, 3 }
  0x5f   : > { %602 = vmatpush.bf16.msra.mxu2 %v978_v9  ;;  %v258_v48 = vrot.slane %v256_v38, 7  ;;  %v1062_v49 = vld [vmem:[%s1570_s21 + $0xe4] sm:$0xf]  ;;  %v947_v50 = vld [vmem:[%s1570_s21 + $0xe8] sm:$0xf0]  ;;  %s697_s7 = scalar_lea.hbm %s1767_s2, %s1030_s9  ;;  %s684_s15 = scalar_lea.sflag [#allocation5], %s1559_s18 }
  0x60   : > { %615 = vmatpush.bf16.msra.mxu3 %v862_v25  ;;  %v1078_v51 = vld [vmem:[%s1570_s21 + $0x164] sm:$0xf]  ;;  %v1011_v52 = vld [vmem:[%s1570_s21 + $0x168] sm:$0xf0]  ;;  %v1033_v55 = vld [vmem:[%s1563_s26 + $0x4] sm:$0xf0]  ;;  %v254_v58 = vor.u32 %v252_v36, %v251_v42  ;;  %v950_v12 = vor.u32 %v1062_v49, %v947_v50 }
  0x61   : > { %575 = vmatpush.bf16.msra.mxu0 %v842_v20  ;;  %v660_v54 = vld [vmem:[#allocation1 + $0x3] ss:$4 sm:$0xff]  ;;  %v261_v62 = vor.u32 %v259_v39, %v258_v48  ;;  %v677_v0 = vld [vmem:[#allocation2] sm:$0x1]  ;;  %v680_v5 = vld [vmem:[#allocation2 + $0x1] sm:$0x1]  ;;  %v1669_v6 = vor.u32 %v1033_v55, %v829_v45  ;;  %v1014_v13 = vor.u32 %v1078_v51, %v1011_v52 }
  0x62   : > { %589 = vmatpush.bf16.msra.mxu1 %v906_v27  ;;  %v664_v59 = vld [vmem:[#allocation1 + $0x23] ss:$4 sm:$0xff]  ;;  %v665_v60 = vshrl.u32 %v660_v54, 16  ;;  %v267_v3 = vsel %vm1657_vm5, %v240_v40, %v254_v58  ;;  %s700_s26 = sshll.u32 %s697_s7, 4  ;;  %s701_s26 = int_to_ptr.hbm [resolvable:$true] %s700_s26 }
  0x63   : > { %603 = vmatpush.bf16.msra.mxu2 %v970_v28  ;;  %v1036_v61 = vld [vmem:[%s1570_s21 + $0x14] sm:$0xf]  ;;  %v669_v63 = vshrl.u32 %v664_v59, 16  ;;  %v843_v1 = vld [vmem:[%s1570_s21 + $0x18] sm:$0xf0]  ;;  %v268_v7 = vsel %vm1657_vm5, %v241_v44, %v261_v62  ;;  %v273_v8 = vunpack.c.l.b16 %v267_v3  ;;  %s1272_s16 = sshra.s32 %s701_s26, 4  ;;  %s1273_s16 = int_to_ptr.hbm [resolvable:$true] %s1272_s16 }
  0x64   : > { %616 = vmatpush.bf16.msra.mxu3 %v854_v43  ;;  %v1025_v4 = vrot.slane %v665_v60, 9  ;;  %v1060_v10 = vld [vmem:[%s1570_s21 + $0xd4] sm:$0xf]  ;;  %v846_v11 = vor.u32 %v1036_v61, %v843_v1  ;;  %v274_v14 = vunpack.c.l.b16 %v268_v7  ;;  %v939_v16 = vld [vmem:[%s1570_s21 + $0xd8] sm:$0xf0]  ;;  %s1274_s0 = scalar_lea.hbm %s1273_s16, 32  ;;  %p1279_p4 = scmp.lt.s32.totalorder %s1273_s16, %s1767_s2 }
  0x65   : > { %576 = vmatpush.bf16.msra.mxu0 %v834_v41  ;;  %v1026_v9 = vrot.slane %v669_v63, 9  ;;  %v1034_v17 = vld [vmem:[%s1570_s21 + $0x4] sm:$0xf]  ;;  %v835_v18 = vld [vmem:[%s1570_s21 + $0x8] sm:$0xf0]  ;;  %v942_v24 = vor.u32 %v1060_v10, %v939_v16  ;;  %p1275_p10 = scmp.ne.s32.totalorder %s1273_s16, %s1274_s0 }
  0x66   : > { %590 = vmatpush.bf16.msra.mxu1 %v898_v46  ;;  %v678_v15 = vsel %vm1657_vm5, %v1025_v4, %v677_v0  ;;  %v1076_v20 = vld [vmem:[%s1570_s21 + $0x154] sm:$0xf]  ;;  %v1003_v21 = vld [vmem:[%s1570_s21 + $0x158] sm:$0xf0]  ;;  %v323_v22 = vpack.c.b16 %v274_v14, %v273_v8  ;;  %v838_v23 = vor.u32 %v1034_v17, %v835_v18  ;;  %v1058_v26 = vld [vmem:[%s1570_s21 + $0xc4] sm:$0xf] }
  0x67   : > { %604 = vmatpush.bf16.msra.mxu2 %v962_v47  ;;  %679 = vst [vmem:[#allocation2] sm:$0x1] %v678_v15  ;;  %v681_v19 = vsel %vm1657_vm5, %v1026_v9, %v680_v5  ;;  %v1006_v25 = vor.u32 %v1076_v20, %v1003_v21  ;;  %v931_v27 = vld [vmem:[%s1570_s21 + $0xc8] sm:$0xf0]  ;;  %v1074_v28 = vld [vmem:[%s1570_s21 + $0x144] sm:$0xf]  ;;  %p1276_p12 = pnand %p1275_p10, %p1487_p8 }
  0x68   : > { %682 = vst [vmem:[#allocation2 + $0x1] sm:$0x1] %v681_v19  ;;  %617 = vmatpush.bf16.msra.mxu3 %v846_v11  ;;  %577 = vmatmul.bf16.vlgmr.msra.gmra.mxu0 %v323_v22  ;;  %v995_v29 = vld [vmem:[%s1570_s21 + $0x148] sm:$0xf0]  ;;  %v934_v30 = vor.u32 %v1058_v26, %v931_v27  ;;  %v1056_v32 = vld [vmem:[%s1570_s21 + $0xb4] sm:$0xf] }
  0x69   : > { %625 = vmatpush.bf16.msrb.mxu0 %v958_v56  ;;  %591 = vmatmul.bf16.vlgmr.msra.gmra.mxu1 %v1669_v6  ;;  %v998_v31 = vor.u32 %v1074_v28, %v995_v29  ;;  %v923_v33 = vld [vmem:[%s1570_s21 + $0xb8] sm:$0xf0]  ;;  %v1072_v34 = vld [vmem:[%s1570_s21 + $0x134] sm:$0xf]  ;;  %v1054_v38 = vld [vmem:[%s1570_s21 + $0xa4] sm:$0xf]  ;;  %p1277_p1 = pneg %p1276_p12 }
  0x6a   : > { %639 = vmatpush.bf16.msrb.mxu1 %v1022_v57  ;;  %605 = vmatmul.bf16.vlgmr.msra.gmra.mxu2 %v1665_v2  ;;  %v987_v35 = vld [vmem:[%s1570_s21 + $0x138] sm:$0xf0]  ;;  %v926_v36 = vor.u32 %v1056_v32, %v923_v33  ;;  %v915_v39 = vld [vmem:[%s1570_s21 + $0xa8] sm:$0xf0]  ;;  %v1070_v40 = vld [vmem:[%s1570_s21 + $0x124] sm:$0xf] }
  0x6b   : > { %v990_v37 = vor.u32 %v1072_v34, %v987_v35  ;;  %v979_v41 = vld [vmem:[%s1570_s21 + $0x128] sm:$0xf0]  ;;  %v918_v42 = vor.u32 %v1054_v38, %v915_v39  ;;  %v1052_v44 = vld [vmem:[%s1570_s21 + $0x94] sm:$0xf]  ;;  %v907_v45 = vld [vmem:[%s1570_s21 + $0x98] sm:$0xf0] }
  0x6c   : > { %618 = vmatpush.bf16.msra.mxu3 %v838_v23  ;;  %v982_v43 = vor.u32 %v1070_v40, %v979_v41  ;;  %v1068_v46 = vld [vmem:[%s1570_s21 + $0x114] sm:$0xf]  ;;  %v971_v47 = vld [vmem:[%s1570_s21 + $0x118] sm:$0xf0]  ;;  %v910_v48 = vor.u32 %v1052_v44, %v907_v45  ;;  %v1050_v50 = vld [vmem:[%s1570_s21 + $0x84] sm:$0xf] }
  0x6d   : > { %626 = vmatpush.bf16.msrb.mxu0 %v950_v12  ;;  %v974_v49 = vor.u32 %v1068_v46, %v971_v47  ;;  %v899_v51 = vld [vmem:[%s1570_s21 + $0x88] sm:$0xf0]  ;;  %v1066_v52 = vld [vmem:[%s1570_s21 + $0x104] sm:$0xf] }
  0x6e   : > { %640 = vmatpush.bf16.msrb.mxu1 %v1014_v13  ;;  %v963_v53 = vld [vmem:[%s1570_s21 + $0x108] sm:$0xf0]  ;;  %v902_v54 = vor.u32 %v1050_v50, %v899_v51  ;;  %s1278_s21 = scalar_lea.hbm %s1767_s2, 256 }
  0x6f   : > { %619 = vmatmul.bf16.vlgmr.msra.gmra.mxu3 %v323_v22  ;;  %v966_v55 = vor.u32 %v1066_v52, %v963_v53  ;;  %p1280_p3 = scmp.lt.s32.totalorder %s1278_s21, %s1274_s0 }
  0x71   : > { %627 = vmatpush.bf16.msrb.mxu0 %v942_v24  ;;  %p1281_p6 = por %p1280_p3, %p1279_p4 }
  0x72   : > { %641 = vmatpush.bf16.msrb.mxu1 %v1006_v25 }
  0x73   : > { %p1282_p7 = pnand %p1281_p6, %p1277_p1 }
  0x75   : > { %628 = vmatpush.bf16.msrb.mxu0 %v934_v30 }
  0x76   : > { %642 = vmatpush.bf16.msrb.mxu1 %v998_v31 }
  0x79   : > { %629 = vmatpush.bf16.msrb.mxu0 %v926_v36 }
  0x7a   : > { %643 = vmatpush.bf16.msrb.mxu1 %v990_v37 }
  0x7d   : > { %630 = vmatpush.bf16.msrb.mxu0 %v918_v42 }
  0x7e   : > { %644 = vmatpush.bf16.msrb.mxu1 %v982_v43 }
  0x81   : > { %631 = vmatpush.bf16.msrb.mxu0 %v910_v48 }
  0x82   : > { %645 = vmatpush.bf16.msrb.mxu1 %v974_v49 }
  0x85   : > { %632 = vmatpush.bf16.msrb.mxu0 %v902_v54 }
  0x86   : > { %646 = vmatpush.bf16.msrb.mxu1 %v966_v55 }
  0x88   : > { %633 = vmatmul.bf16.vlgmr.msrb.gmra.mxu0 %v1669_v6 }
  0x89   : > { %647 = vmatmul.bf16.vlgmr.msrb.gmra.mxu1 %v1665_v2 }
  0xe5   : > { %v578_v57 = vpop.f32.mrf.mxu0 }
  0xe6   : > { %v592_v56 = vpop.f32.mrf.mxu1 }
  0xe7   : > { %v593_v58 = vadd.f32 %v592_v56, %v578_v57 }
  0xed   : > { %v606_v59 = vpop.f32.mrf.mxu2  ;;  %v580_v62 = vpop.f32.mrf.mxu0 }
  0xee   : > { %v607_v60 = vadd.f32 %v606_v59, %v593_v58  ;;  %v594_v61 = vpop.f32.mrf.mxu1 }
  0xef   : > { %v595_v63 = vadd.f32 %v594_v61, %v580_v62 }
  0xf0   : > { %653 = vst [vmem:[%s1577_s24] sm:$0xff] %v607_v60 }
  0xf2   : > { %v620_v3 = vpop.f32.mrf.mxu3 }
  0xf5   : > { %v608_v0 = vpop.f32.mrf.mxu2 }
  0xf6   : > { %v609_v1 = vadd.f32 %v608_v0, %v595_v63 }
  0xf8   : > { %655 = vst [vmem:[%s1577_s24 + $0x10] sm:$0xff] %v609_v1 }
  0xfa   : > { %v622_v7 = vpop.f32.mrf.mxu3 }
 0x105   : > { %v634_v4 = vpop.f32.mrf.mxu0 }
 0x106   : > { %v648_v2 = vpop.f32.mrf.mxu1  ;;  %v635_v5 = vadd.f32 %v634_v4, %v620_v3 }
 0x108   : > { %v649_v6 = vadd.f32 %v648_v2, %v635_v5 }
 0x10a   : > { %654 = vst [vmem:[%s1577_s24 + $0x8] sm:$0xff] %v649_v6 }
 0x10d   : > { %v636_v8 = vpop.f32.mrf.mxu0 }
 0x10e   : > { %v637_v9 = vadd.f32 %v636_v8, %v622_v7  ;;  %v650_v10 = vpop.f32.mrf.mxu1 }
 0x110   : > { %v651_v11 = vadd.f32 %v650_v10, %v637_v9 }
 0x112   : > { %656 = vst [vmem:[%s1577_s24 + $0x18] sm:$0xff] %v651_v11 }
 0x113   : > { %1285 = shalt.err (!%p1282_p7)
}
 0x114   : > { %s1389_s18 = smov 256   ;;  %s1390_s24 = smov 2048  }
 0x115   : > { %s1391_s20 = smov 16  }
 0x116   : > { %1089 = dma.vmem_to_hbm [thread:$0]  (%p1487_p8), %s699_s4, 512, %s701_s26, %s684_s15, %s1389_s18, %s1390_s24, %s1391_s20  }
 0x117 PF: > { %p1103_p11 = scmp.ge.s32.totalorder %s1384_s19, 2  ;;  %s715_s6 = sand.u32 1, %s1356_s12  }
 0x118   : > { %s716_s9 = scalar_lea.sflag [#allocation5], %s715_s6 }
 0x119   : > { %p1099_p13 = pnand %p1103_p11, %p1494_p9 }
 0x11b   : > { %p1100_p5 = pneg %p1099_p13 }
 0x11d   : > { %1339 = dma.done.wait (%p1100_p5), %s716_s9, 512  }
 0x11e   : > { %1341 = vsyncadd (%p1100_p5), %s716_s9, 4294966784  ;;  %s21_s19 = sadd.s32 1, %s1384_s19   ;;  %s1788_s16 = sld [smem:[#allocation12_spill]] }
 0x11f   : > { %p18_p0 = scmp.ge.s32.totalorder %s21_s19, 10   ;;  %s1789_s27 = sld [smem:[#allocation13_spill]] }
 0x120   : > { %s1790_s18 = sld [smem:[#allocation14_spill]]  ;;  %s1791_s9 = smov %s1348_s10 }
 0x121   : > { %s1792_s10 = smov %s1352_s11  ;;  %s1793_s11 = smov %s1541_s30 }
 0x122   : > { %s1794_s12 = smov %s1360_s13  ;;  %s1795_s13 = smov %s1364_s14 }
 0x123   : > { %s1796_s14 = smov %s1508_s5  ;;  %s1797_s15 = smov %s1376_s17 }
 0x124   :  { %20 = sbr.rel (!%p18_p0) target bundleno = 13 (0xd), region = 92 }
 0x125   : > { %s1798_s17 = smov %s1789_s27 }
 0x129   :  { %722 = vsyncpa [#allocation4], 1 }
 0x12a   :  { %724 = vsyncpa [#allocation4 + $0x1], 1 }
 0x12b   :  { %725 = vsyncpa [#allocation7], 1 }
 0x12c   :  { %727 = vsyncpa [#allocation7 + $0x1], 1 }
 0x12d   :  { %728 = vsyncpa [#allocation5], 1 }
 0x12e   :  { %730 = vsyncpa [#allocation5 + $0x1], 1 }

</bundles_post_ra>
